<compile_context>
chip_gen: v7x
topology: tpu7x:2x2x1
jax: 0.10.0
libtpu: 0.0.40
codegen_flags: <defaults>
</compile_context>

<pallas_src>
import functools

import jax
import jax.numpy as jnp
from jax.experimental import pallas as pl
from jax.experimental.pallas import tpu as pltpu

LANE = 128


def _vb_kernel(gt_ref, pd_ref, loss_ref, sum_acc, cnt_acc,
               *, W, u0, v0, max_depth, eps, fx, loss_weight):
    b = pl.program_id(0)          # batch index
    i = pl.program_id(1)          # spatial chunk index
    tm, ln = sum_acc.shape        # (tile_m, 128), static

    @pl.when(jnp.logical_and(b == 0, i == 0))
    def _():
        sum_acc[...] = jnp.zeros_like(sum_acc)
        cnt_acc[...] = jnp.zeros_like(cnt_acc)

    # forward(): divide by 10 (as multiply); VBloss(): clamp negative predictions.
    gt = gt_ref[0] * 0.1
    pd = pd_ref[0] * 0.1
    pd = jnp.where(pd < 0.0, jnp.float32(0.001), pd)

    # transfer_xyz(): validity mask (depth-range; edge mask is all-valid, see header TODO).
    mask = jnp.logical_and(gt > 0.0, gt <= max_depth)

    # Pixel coordinates generated in-kernel: flat spatial index n -> (row, col).
    row_blk = jax.lax.broadcasted_iota(jnp.int32, (tm, ln), 0)
    lane = jax.lax.broadcasted_iota(jnp.int32, (tm, ln), 1)
    n = (i * tm + row_blk) * ln + lane                # flat spatial index within image
    n_f = n.astype(jnp.float32)                       # exact: n < 2^24
    row_pix = jnp.floor(n_f / jnp.float32(W))         # n // W (exact for realistic H*W)
    col_pix = n_f - row_pix * jnp.float32(W)          # n %  W
    uu0 = col_pix - u0
    vv0 = row_pix - v0

    # Reprojection residual: u - u_proj = uu0*(1 - gt/pd), v - v_proj = vv0*(1 - gt/pd).
    f = 1.0 - gt / pd
    l1 = gt - pd
    dist = jnp.sqrt((uu0 * uu0 + vv0 * vv0) * (f * f) + l1 * l1 + eps)

    # Element-wise (VPU-only) accumulation; cross-lane reduce happens once at the end.
    sum_acc[...] = sum_acc[...] + jnp.where(mask, dist, 0.0)
    cnt_acc[...] = cnt_acc[...] + mask.astype(jnp.float32)

    @pl.when(jnp.logical_and(b == pl.num_programs(0) - 1,
                             i == pl.num_programs(1) - 1))
    def _():
        total = jnp.sum(sum_acc[...])
        count = jnp.sum(cnt_acc[...])
        # NOTE: count == 0 gives NaN/Inf, same hazard as the PyTorch reference.
        loss = loss_weight * (total / count) / fx
        loss_ref[...] = jnp.full((1, 1), loss, dtype=loss_ref.dtype)


def _pick_tile_rows(rows, cap=2048):
    """Largest valid sublane tile: full extent if small, else a multiple of 8 dividing rows."""
    if rows <= cap:
        return rows
    for t in range(cap - cap % 8, 0, -8):
        if rows % t == 0:
            return t
    return rows  # fallback: single (possibly large) block


def visual_bias_loss(rgb, depth_pred, depth_gt, *, fx, fy, u0, v0,
                     max_depth, loss_weight=1.0, eps=1e-4, max_tile_rows=2048):
    """Pallas implementation of VisualBiasLoss.forward (rgb only feeds the Canny mask)."""
    del rgb  # TODO(synk): rgb is only used by the OpenCV edge mask (see header comment).
    del fy   # fy cancels out of the reprojection residual.
    B, _, H, W = depth_pred.shape
    N = H * W
    assert N % LANE == 0, "H*W must be a multiple of 128"
    rows = N // LANE
    tile_m = _pick_tile_rows(rows, max_tile_rows)
    chunks = rows // tile_m

    gt = depth_gt.astype(jnp.float32).reshape(B, rows, LANE)
    pd = depth_pred.astype(jnp.float32).reshape(B, rows, LANE)

    kernel = functools.partial(
        _vb_kernel,
        W=W, u0=float(u0), v0=float(v0), max_depth=float(max_depth),
        eps=float(eps), fx=float(fx), loss_weight=float(loss_weight))

    in_spec = pl.BlockSpec((1, tile_m, LANE), lambda b, i: (b, i, 0))

    loss = pl.pallas_call(
        kernel,
        out_shape=jax.ShapeDtypeStruct((1, 1), jnp.float32),
        grid_spec=pltpu.PrefetchScalarGridSpec(
            num_scalar_prefetch=0,
            grid=(B, chunks),
            in_specs=[in_spec, in_spec],
            out_specs=pl.BlockSpec((1, 1), lambda b, i: (0, 0)),
            scratch_shapes=[pltpu.VMEM((tile_m, LANE), jnp.float32),
                            pltpu.VMEM((tile_m, LANE), jnp.float32)]),
        compiler_params=pltpu.CompilerParams(
            dimension_semantics=("arbitrary", "arbitrary")),
        # TODO(synk): v7x dual-TensorCore split would need per-chunk partial-sum outputs
        #             (final reduce in the wrapper); kept single-accumulator for simplicity.
    )(gt, pd)
    return loss[0, 0]


def visual_bias_loss_ref(rgb, depth_pred, depth_gt, *, fx, fy, u0, v0,
                         max_depth, loss_weight=1.0, eps=1e-4):
    """Pure-JAX reference mirroring the PyTorch op order (all-ones edge mask)."""
    del rgb
    B, _, H, W = depth_pred.shape
    N = H * W
    gt = (depth_gt / 10.0).reshape(B, N)
    pd = (depth_pred / 10.0).reshape(B, N)
    pd = jnp.where(pd < 0.0, 0.001, pd)
    u = jnp.tile(jnp.arange(W, dtype=jnp.float32), (H, 1)).reshape(1, N)
    v = jnp.tile(jnp.arange(H, dtype=jnp.float32), (W, 1)).T.reshape(1, N)
    uu0, vv0 = u - u0, v - v0
    mask = jnp.logical_and(gt > 0.0, gt <= max_depth)
    x = uu0 * gt / fx
    y = vv0 * gt / fy
    z = pd
    u_proj = x * fx / z + u0
    v_proj = y * fy / z + v0
    du, dv, l1 = u - u_proj, v - v_proj, gt - pd
    dist = jnp.sqrt(du * du + dv * dv + l1 * l1 + eps)
    m = mask.astype(jnp.float32)
    return loss_weight * (jnp.sum(dist * m) / jnp.sum(m)) / fx


if __name__ == "__main__":
    key = jax.random.PRNGKey(0)
    k1, k2, k3 = jax.random.split(key, 3)
    B, H, W = 2, 16, 16

    rgb = jax.random.uniform(k1, (B, 3, H, W), jnp.float32, minval=0.0, maxval=255.0)
    # Range chosen so some pixels exceed max_depth*10 (exercises the validity mask).
    depth_gt = jax.random.uniform(k2, (B, 1, H, W), jnp.float32, minval=1.0, maxval=120.0)
    depth_pred = depth_gt + 2.0 * jax.random.normal(k3, (B, 1, H, W), jnp.float32)

    params = dict(fx=256.0, fy=256.0, u0=W / 2.0, v0=H / 2.0,
                  max_depth=10.0, loss_weight=1.0, eps=1e-4)

    loss = visual_bias_loss(rgb, depth_pred, depth_gt, **params)
    loss = jax.block_until_ready(loss)

    loss_ref = visual_bias_loss_ref(rgb, depth_pred, depth_gt, **params)
    assert jnp.isfinite(loss), "loss is not finite"
    assert jnp.allclose(loss, loss_ref, rtol=1e-4, atol=1e-6), (loss, loss_ref)

    print("KERNEL_OK")
</pallas_src>

<mosaic_0001>
module attributes {stable_mosaic.version = 11 : i64} {
  func.func @_vb_kernel(%arg0: i32, %arg1: i32, %arg2: memref<1x2x128xf32, #tpu.memory_space<vmem>>, %arg3: memref<1x2x128xf32, #tpu.memory_space<vmem>>, %arg4: memref<1x1xf32, #tpu.memory_space<vmem>>, %arg5: memref<2x128xf32, #tpu.memory_space<vmem>>, %arg6: memref<2x128xf32, #tpu.memory_space<vmem>>) attributes {dimension_semantics = [#tpu.dimension_semantics<arbitrary>, #tpu.dimension_semantics<arbitrary>], iteration_bounds = array<i64: 2, 1>, scalar_prefetch = 0 : i64, scratch_operands = 2 : i64, tpu.core_type = #tpu.core_type<tc>, window_params = [{transform_indices = @transform_0, window_bounds = array<i64: 1, 2, 128>}, {transform_indices = @transform_1, window_bounds = array<i64: 1, 2, 128>}, {pipeline_mode = #tpu.pipeline_mode<synchronous>, transform_indices = @transform_2, window_bounds = array<i64: 1, 1>}]} {
    %c0_i32 = arith.constant 0 : i32
    %0 = arith.cmpi eq, %arg0, %c0_i32 : i32
    %c0_i32_0 = arith.constant 0 : i32
    %1 = arith.cmpi eq, %arg1, %c0_i32_0 : i32
    %2 = arith.andi %0, %1 : i1
    %3 = arith.extui %2 : i1 to i32
    %c0_i32_1 = arith.constant 0 : i32
    %4 = arith.cmpi ne, %3, %c0_i32_1 : i32
    scf.if %4 {
      %cst_29 = arith.constant 0.000000e+00 : f32
      %70 = vector.broadcast %cst_29 : f32 to vector<2x128xf32>
      %c0_30 = arith.constant 0 : index
      %c0_31 = arith.constant 0 : index
      %71 = vector.load %arg5[%c0_30, %c0_31] : memref<2x128xf32, #tpu.memory_space<vmem>>, vector<2x128xf32>
      tpu.vector_store %arg5[%c0_30, %c0_31], %70 {strides = array<i32>} : memref<2x128xf32, #tpu.memory_space<vmem>>, vector<2x128xf32>,
      %cst_32 = arith.constant 0.000000e+00 : f32
      %72 = vector.broadcast %cst_32 : f32 to vector<2x128xf32>
      %c0_33 = arith.constant 0 : index
      %c0_34 = arith.constant 0 : index
      %73 = vector.load %arg6[%c0_33, %c0_34] : memref<2x128xf32, #tpu.memory_space<vmem>>, vector<2x128xf32>
      tpu.vector_store %arg6[%c0_33, %c0_34], %72 {strides = array<i32>} : memref<2x128xf32, #tpu.memory_space<vmem>>, vector<2x128xf32>,
    } else {
    }
    %c0 = arith.constant 0 : index
    %c0_2 = arith.constant 0 : index
    %c0_3 = arith.constant 0 : index
    %5 = vector.load %arg2[%c0, %c0_2, %c0_3] : memref<1x2x128xf32, #tpu.memory_space<vmem>>, vector<1x2x128xf32>
    %6 = vector.shape_cast %5 : vector<1x2x128xf32> to vector<2x128xf32>
    %cst = arith.constant 1.000000e-01 : f32
    %7 = vector.broadcast %cst : f32 to vector<2x128xf32>
    %8 = arith.mulf %6, %7 : vector<2x128xf32>
    %c0_4 = arith.constant 0 : index
    %c0_5 = arith.constant 0 : index
    %c0_6 = arith.constant 0 : index
    %9 = vector.load %arg3[%c0_4, %c0_5, %c0_6] : memref<1x2x128xf32, #tpu.memory_space<vmem>>, vector<1x2x128xf32>
    %10 = vector.shape_cast %9 : vector<1x2x128xf32> to vector<2x128xf32>
    %cst_7 = arith.constant 1.000000e-01 : f32
    %11 = vector.broadcast %cst_7 : f32 to vector<2x128xf32>
    %12 = arith.mulf %10, %11 : vector<2x128xf32>
    %cst_8 = arith.constant 0.000000e+00 : f32
    %13 = vector.broadcast %cst_8 : f32 to vector<2x128xf32>
    %14 = arith.cmpf olt, %12, %13 : vector<2x128xf32>
    %cst_9 = arith.constant 1.000000e-03 : f32
    %15 = vector.broadcast %cst_9 : f32 to vector<2x128xf32>
    %16 = arith.select %14, %15, %12 : vector<2x128xi1>, vector<2x128xf32>
    %cst_10 = arith.constant 0.000000e+00 : f32
    %17 = vector.broadcast %cst_10 : f32 to vector<2x128xf32>
    %18 = arith.cmpf ogt, %8, %17 : vector<2x128xf32>
    %cst_11 = arith.constant 1.000000e+01 : f32
    %19 = vector.broadcast %cst_11 : f32 to vector<2x128xf32>
    %20 = arith.cmpf ole, %8, %19 : vector<2x128xf32>
    %21 = arith.andi %18, %20 : vector<2x128xi1>
    %22 = tpu.iota {dimensions = array<i32: 0>} : vector<2x128xi32>
    %23 = tpu.iota {dimensions = array<i32: 1>} : vector<2x128xi32>
    %c2_i32 = arith.constant 2 : i32
    %24 = arith.muli %arg1, %c2_i32 : i32
    %25 = vector.broadcast %24 : i32 to vector<2x128xi32>
    %26 = arith.addi %25, %22 : vector<2x128xi32>
    %c128_i32 = arith.constant 128 : i32
    %27 = vector.broadcast %c128_i32 : i32 to vector<2x128xi32>
    %28 = arith.muli %26, %27 : vector<2x128xi32>
    %29 = arith.addi %28, %23 : vector<2x128xi32>
    %30 = arith.sitofp %29 : vector<2x128xi32> to vector<2x128xf32>
    %cst_12 = arith.constant 1.600000e+01 : f32
    %31 = vector.broadcast %cst_12 : f32 to vector<2x128xf32>
    %32 = arith.divf %30, %31 : vector<2x128xf32>
    %33 = math.floor %32 : vector<2x128xf32>
    %cst_13 = arith.constant 1.600000e+01 : f32
    %34 = vector.broadcast %cst_13 : f32 to vector<2x128xf32>
    %35 = arith.mulf %33, %34 : vector<2x128xf32>
    %36 = arith.subf %30, %35 : vector<2x128xf32>
    %cst_14 = arith.constant 8.000000e+00 : f32
    %37 = vector.broadcast %cst_14 : f32 to vector<2x128xf32>
    %38 = arith.subf %36, %37 : vector<2x128xf32>
    %cst_15 = arith.constant 8.000000e+00 : f32
    %39 = vector.broadcast %cst_15 : f32 to vector<2x128xf32>
    %40 = arith.subf %33, %39 : vector<2x128xf32>
    %41 = arith.divf %8, %16 : vector<2x128xf32>
    %cst_16 = arith.constant 1.000000e+00 : f32
    %42 = vector.broadcast %cst_16 : f32 to vector<2x128xf32>
    %43 = arith.subf %42, %41 : vector<2x128xf32>
    %44 = arith.subf %8, %16 : vector<2x128xf32>
    %45 = arith.mulf %38, %38 : vector<2x128xf32>
    %46 = arith.mulf %40, %40 : vector<2x128xf32>
    %47 = arith.addf %45, %46 : vector<2x128xf32>
    %48 = arith.mulf %43, %43 : vector<2x128xf32>
    %49 = arith.mulf %47, %48 : vector<2x128xf32>
    %50 = arith.mulf %44, %44 : vector<2x128xf32>
    %51 = arith.addf %49, %50 : vector<2x128xf32>
    %cst_17 = arith.constant 9.99999974E-5 : f32
    %52 = vector.broadcast %cst_17 : f32 to vector<2x128xf32>
    %53 = arith.addf %51, %52 : vector<2x128xf32>
    %54 = math.sqrt %53 : vector<2x128xf32>
    %c0_18 = arith.constant 0 : index
    %c0_19 = arith.constant 0 : index
    %55 = vector.load %arg5[%c0_18, %c0_19] : memref<2x128xf32, #tpu.memory_space<vmem>>, vector<2x128xf32>
    %cst_20 = arith.constant 0.000000e+00 : f32
    %56 = vector.broadcast %cst_20 : f32 to vector<2x128xf32>
    %57 = arith.select %21, %54, %56 : vector<2x128xi1>, vector<2x128xf32>
    %58 = arith.addf %55, %57 : vector<2x128xf32>
    %c0_21 = arith.constant 0 : index
    %c0_22 = arith.constant 0 : index
    %59 = vector.load %arg5[%c0_21, %c0_22] : memref<2x128xf32, #tpu.memory_space<vmem>>, vector<2x128xf32>
    tpu.vector_store %arg5[%c0_21, %c0_22], %58 {strides = array<i32>} : memref<2x128xf32, #tpu.memory_space<vmem>>, vector<2x128xf32>,
    %c0_23 = arith.constant 0 : index
    %c0_24 = arith.constant 0 : index
    %60 = vector.load %arg6[%c0_23, %c0_24] : memref<2x128xf32, #tpu.memory_space<vmem>>, vector<2x128xf32>
    %61 = arith.extui %21 : vector<2x128xi1> to vector<2x128xi32>
    %62 = arith.sitofp %61 : vector<2x128xi32> to vector<2x128xf32>
    %63 = arith.addf %60, %62 : vector<2x128xf32>
    %c0_25 = arith.constant 0 : index
    %c0_26 = arith.constant 0 : index
    %64 = vector.load %arg6[%c0_25, %c0_26] : memref<2x128xf32, #tpu.memory_space<vmem>>, vector<2x128xf32>
    tpu.vector_store %arg6[%c0_25, %c0_26], %63 {strides = array<i32>} : memref<2x128xf32, #tpu.memory_space<vmem>>, vector<2x128xf32>,
    %c1_i32 = arith.constant 1 : i32
    %65 = arith.cmpi eq, %arg0, %c1_i32 : i32
    %c0_i32_27 = arith.constant 0 : i32
    %66 = arith.cmpi eq, %arg1, %c0_i32_27 : i32
    %67 = arith.andi %65, %66 : i1
    %68 = arith.extui %67 : i1 to i32
    %c0_i32_28 = arith.constant 0 : i32
    %69 = arith.cmpi ne, %68, %c0_i32_28 : i32
    scf.if %69 {
      %c0_29 = arith.constant 0 : index
      %c0_30 = arith.constant 0 : index
      %70 = vector.load %arg5[%c0_29, %c0_30] : memref<2x128xf32, #tpu.memory_space<vmem>>, vector<2x128xf32>
      %71 = vector.shape_cast %70 : vector<2x128xf32> to vector<1x2x128xf32>
      %cst_31 = arith.constant dense<0.000000e+00> : vector<1xf32>
      %72 = vector.multi_reduction <add>, %71, %cst_31 [1, 2] : vector<1x2x128xf32> to vector<1xf32>
      %73 = vector.shape_cast %72 : vector<1xf32> to vector<1x1x1xf32>
      %74 = vector.extract %73[0, 0, 0] : f32 from vector<1x1x1xf32>
      %c0_32 = arith.constant 0 : index
      %c0_33 = arith.constant 0 : index
      %75 = vector.load %arg6[%c0_32, %c0_33] : memref<2x128xf32, #tpu.memory_space<vmem>>, vector<2x128xf32>
      %76 = vector.shape_cast %75 : vector<2x128xf32> to vector<1x2x128xf32>
      %cst_34 = arith.constant dense<0.000000e+00> : vector<1xf32>
      %77 = vector.multi_reduction <add>, %76, %cst_34 [1, 2] : vector<1x2x128xf32> to vector<1xf32>
      %78 = vector.shape_cast %77 : vector<1xf32> to vector<1x1x1xf32>
      %79 = vector.extract %78[0, 0, 0] : f32 from vector<1x1x1xf32>
      %80 = arith.divf %74, %79 : f32
      %cst_35 = arith.constant 1.000000e+00 : f32
      %81 = arith.mulf %cst_35, %80 : f32
      %cst_36 = arith.constant 2.560000e+02 : f32
      %82 = arith.divf %81, %cst_36 : f32
      %83 = vector.broadcast %82 : f32 to vector<1x1xf32>
      %c0_37 = arith.constant 0 : index
      %c0_38 = arith.constant 0 : index
      %84 = vector.load %arg4[%c0_37, %c0_38] : memref<1x1xf32, #tpu.memory_space<vmem>>, vector<1x1xf32>
      tpu.vector_store %arg4[%c0_37, %c0_38], %83 {strides = array<i32>} : memref<1x1xf32, #tpu.memory_space<vmem>>, vector<1x1xf32>,
    } else {
    }
    return
  }
  func.func @transform_0(%arg0: i32, %arg1: i32) -> (i32, i32, i32) {
    %c0_i32 = arith.constant 0 : i32
    %c0_i32_0 = arith.constant 0 : i32
    return %arg0, %arg1, %c0_i32 : i32, i32, i32
  }
  func.func @transform_1(%arg0: i32, %arg1: i32) -> (i32, i32, i32) {
    %c0_i32 = arith.constant 0 : i32
    %c0_i32_0 = arith.constant 0 : i32
    return %arg0, %arg1, %c0_i32 : i32, i32, i32
  }
  func.func @transform_2(%arg0: i32, %arg1: i32) -> (i32, i32) {
    %c0_i32 = arith.constant 0 : i32
    %c0_i32_0 = arith.constant 0 : i32
    %c0_i32_1 = arith.constant 0 : i32
    return %c0_i32, %c0_i32_0 : i32, i32
  }
}

</mosaic_0001>

<bundles_post_ra>
// kernel: tpu_custom_call.1
= control target key start
LH: loop header
LB: loop body
LE: loop exit
PB: predicated region body
PF: predicated region fallthrough
CT: control target
= control target key end

     0   :  { %7 = vsyncpa [#allocation5], 0  ;;  %s870_s0 = inlined_call_operand.hbm [shape: f32[2,2,128], index: 0, kind: input, shape index: {}]   ;;  %s871_s1 = inlined_call_operand.hbm [shape: f32[2,2,128], index: 1, kind: input, shape index: {}]   ;;  %s872_s2 = inlined_call_operand.hbm [shape: f32[1,1], index: 2, kind: output, shape index: {}]  }
   0x1   :  { %9 = vsyncpa [#allocation5 + $0x1], 0 }
   0x2   :  { %10 = vsyncpa [#allocation8], 0 }
   0x3   :  { %12 = vsyncpa [#allocation8 + $0x1], 0 }
   0x4   :  { %13 = vsyncpa [#allocation6], 0  ;;  %s661_s9 = smov 0   ;;  %s663_s10 = smov 0  }
   0x5   :  { %s665_s11 = smov 0   ;;  %s667_s12 = smov 0  }
   0x6   :  { %s669_s13 = smov 0   ;;  %s671_s14 = smov 0  }
   0x7 LB: > { %s393_s15 = sadd.s32 4294967295, %s639_s14   ;;  %s31_s16 = sadd.s32 1, %s635_s13  ;;  %s639_s14 = sphi %s671_s14, %s19_s14   ;;  %s635_s13 = sphi %s669_s13, %s889_s13   ;;  %s631_s12 = sphi %s667_s12, %s888_s12   ;;  %s627_s11 = sphi %s665_s11, %s887_s11   ;;  %s623_s10 = sphi %s663_s10, %s886_s10   ;;  %s619_s9 = sphi %s661_s9, %s885_s9  }
   0x8   : > { %p33_p0 = scmp.ge.s32.totalorder %s31_s16, 2  ;;  %s40_s17 = sadd.s32 1, %s627_s11 }
   0x9   : > { %p47_p1 = scmp.ne.s32.totalorder %s627_s11, %s623_s10  ;;  %p48_p2 = scmp.eq.s32.totalorder %s639_s14, 0 }
   0xa   : > { %s891_s16 = smov (%p33_p0, %s31_s16), 0  ;;  %p53_p4 = scmp.ne.s32.totalorder %s623_s10, %s619_s9 }
   0xb   : > { %p697_p3 = por %p48_p2, %p47_p1  ;;  %s35_s19 = ssub.s32 %s635_s13, %s891_s16 }
   0xc   : > { %p54_p5 = scmp.eq.s32.totalorder %s393_s15, 0  ;;  %p38_p6 = scmp.eq.s32.totalorder %s35_s19, 0 }
   0xd   : > { %p435_p8 = scmp.lt.s32.totalorder %s639_s14, 2  ;;  %s715_s22 = sand.u32 1, %s627_s11  }
   0xe   : > { %p706_p7 = por %p54_p5, %p53_p4  ;;  %s397_s23 = sshll.u32 %s635_s13, 5 }
   0xf   : > { %s712_s21 = scalar_select %p38_p6, %s627_s11, %s40_s17  }
  0x10   : > { %s875_s20 = scalar_select %p706_p7, 1, 0 }
  0x11   : > { %s396_s24 = sshll.u32 %s715_s22, 1  ;;  %s724_s27 = scalar_lea.hbm %s870_s0, %s397_s23 }
  0x12   : > { %s130_s28 = scalar_lea.vmem [#allocation4], %s396_s24  ;;  %p730_p9 = pnand %p435_p8, %p697_p3 }
  0x13   : > { %s138_s29 = sshll.u32 %s130_s28, 4  ;;  %s127_s3 = scalar_lea.sflag [#allocation5], %s715_s22  ;;  %s734_s29 = int_to_ptr.vmem [resolvable:$true] %s138_s29 }
  0x14   : > { %s495_s4 = scalar_lea.hbm %s724_s27, 32  ;;  %p497_p13 = pneg %p730_p9 }
  0x15   : > { %p496_p12 = scmp.ne.s32.totalorder %s724_s27, %s495_s4  ;;  %s500_s7 = scalar_lea.hbm %s870_s0, 64 }
  0x16   : > { %p501_p2 = scmp.lt.u32.totalorder %s724_s27, %s870_s0  ;;  %p502_p3 = scmp.lt.u32.totalorder %s500_s7, %s495_s4 }
  0x17   : > { %p498_p0 = pnand %p497_p13, %p496_p12  ;;  %p504_p5 = scmp.lt.u32.totalorder %s495_s4, %s724_s27 }
  0x18   : > { %p503_p4 = por %p502_p3, %p501_p2 }
  0x19   : > { %p499_p1 = pneg %p498_p0 }
  0x1a   : > { %p505_p6 = por %p504_p5, %p503_p4 }
  0x1c   : > { %p506_p8 = pnand %p505_p6, %p499_p1 }
  0x1e   : > { %509 = shalt.err (!%p506_p8)
}
  0x1f   : > { %s510_s17 = scalar_lea.vmem %s734_s29, 32  ;;  %s641_s18 = smov [#allocation4]  }
  0x20   : > { %p511_p12 = scmp.ne.s32.totalorder %s734_s29, %s510_s17  ;;  %s515_s19 = sshll.u32 %s641_s18, 4  ;;  %s516_s19 = int_to_ptr.vmem [resolvable:$false] %s515_s19 }
  0x21   : > { %s517_s25 = scalar_lea.vmem %s516_s19, 64  ;;  %p518_p11 = scmp.lt.s32.totalorder %s734_s29, %s516_s19 }
  0x22   : > { %p513_p0 = pnand %p511_p12, %p497_p13  ;;  %p519_p2 = scmp.lt.s32.totalorder %s517_s25, %s510_s17 }
  0x24   : > { %p514_p10 = pneg %p513_p0  ;;  %p520_p3 = por %p519_p2, %p518_p11 }
  0x26   : > { %p521_p4 = pnand %p520_p3, %p514_p10 }
  0x28   : > { %524 = shalt.err (!%p521_p4)
}
  0x29   : > { %431 = dma.hbm_to_vmem [thread:$0]  (!%p730_p9), %s724_s27, 32, %s734_s29, %s127_s3  }
  0x2a   : > { %p877_p1 = scmp.lt.s32.totalorder %s639_s14, 3  ;;  %p878_p5 = scmp.ge.s32.totalorder %s639_s14, 1 }
  0x2b   : > { %s777_s5 = scalar_lea.hbm %s871_s1, %s397_s23  ;;  %s149_s6 = scalar_lea.vmem [#allocation7], %s396_s24 }
  0x2c   : > { %p768_p6 = pnand %p878_p5, %p877_p1  ;;  %s157_s7 = sshll.u32 %s149_s6, 4  ;;  %s158_s7 = int_to_ptr.vmem [resolvable:$true] %s157_s7 }
  0x2d   : > { %s146_s27 = scalar_lea.sflag [#allocation8], %s715_s22  ;;  %s525_s29 = scalar_lea.hbm %s777_s5, 32 }
  0x2e   : > { %s879_s26 = scalar_select %p768_p6, 1, 0 }
  0x2f   : > { %p526_p10 = scmp.ne.s32.totalorder %s777_s5, %s525_s29  ;;  %s530_s23 = scalar_lea.hbm %s871_s1, 64 }
  0x30   : > { %p531_p12 = scmp.lt.u32.totalorder %s777_s5, %s871_s1  ;;  %p532_p0 = scmp.lt.u32.totalorder %s530_s23, %s525_s29 }
  0x31   : > { %p528_p11 = pnand %p526_p10, %p497_p13  ;;  %p534_p3 = scmp.lt.u32.totalorder %s525_s29, %s777_s5 }
  0x32   : > { %p533_p2 = por %p532_p0, %p531_p12 }
  0x33   : > { %p529_p8 = pneg %p528_p11 }
  0x34   : > { %p535_p4 = por %p534_p3, %p533_p2 }
  0x36   : > { %p536_p1 = pnand %p535_p4, %p529_p8 }
  0x38   : > { %539 = shalt.err (!%p536_p1)
}
  0x39   : > { %s540_s22 = scalar_lea.vmem %s158_s7, 32  ;;  %s642_s24 = smov [#allocation7]  }
  0x3a   : > { %p541_p5 = scmp.ne.s32.totalorder %s158_s7, %s540_s22  ;;  %s545_s18 = sshll.u32 %s642_s24, 4  ;;  %s546_s18 = int_to_ptr.vmem [resolvable:$false] %s545_s18 }
  0x3b   : > { %s547_s19 = scalar_lea.vmem %s546_s18, 64  ;;  %p548_p7 = scmp.lt.s32.totalorder %s158_s7, %s546_s18 }
  0x3c   : > { %p543_p10 = pnand %p541_p5, %p497_p13  ;;  %p549_p6 = scmp.lt.s32.totalorder %s547_s19, %s540_s22 }
  0x3e   : > { %p544_p11 = pneg %p543_p10  ;;  %p550_p0 = por %p549_p6, %p548_p7 }
  0x40   : > { %p551_p12 = pnand %p550_p0, %p544_p11 }
  0x42   : > { %554 = shalt.err (!%p551_p12)
}
  0x43   : > { %434 = dma.hbm_to_vmem [thread:$0]  (!%p730_p9), %s777_s5, 32, %s158_s7, %s146_s27  }
  0x44   : > { %p880_p8 = scmp.ne.s32.totalorder %s879_s26, 0 }
  0x45   : > { %s168_s25 = sand.u32 (!%p880_p8), 1, %s623_s10   ;;  %p881_p13 = scmp.ne.s32.totalorder (!%p880_p8), %s875_s20, 0 }
  0x46   : > { %166 = sbr.rel (%p880_p8) target bundleno = 447 (0x1bf), region = 28  ;;  %s401_s28 = sshll.u32 (!%p880_p8), %s168_s25, 1 }
  0x47   : > { %s169_s4 = scalar_lea.sflag (!%p880_p8), [#allocation5], %s168_s25  ;;  %s172_s6 = scalar_lea.vmem (!%p880_p8), [#allocation4], %s401_s28 }
  0x4d   : > { %606 = dma.done.wait (%p881_p13), %s169_s4, 32  }
  0x4e   : > { %608 = vsyncadd (%p881_p13), %s169_s4, 4294967264  ;;  %s178_s29 = scalar_lea.sflag [#allocation8], %s168_s25  ;;  %s181_s3 = scalar_lea.vmem [#allocation7], %s401_s28 }
  0x4f   : > { %610 = dma.done.wait (%p881_p13), %s178_s29, 32  }
  0x50   : > { %612 = vsyncadd (%p881_p13), %s178_s29, 4294967264  ;;  %p202_p7 = scmp.eq.s32.totalorder %s631_s12, 0 }
  0x51   : > { %v643_v0 = vmov (%p202_p7), 0.0  }
  0x52   : > { %207 = sbr.rel (!%p202_p7) target bundleno = 89 (0x59), region = 40  ;;  %208 = vst [vmem:[#allocation2] sm:$0x3] (%p202_p7), %v643_v0  ;;  %209 = vst [vmem:[#allocation3] sm:$0x3] (%p202_p7), %v643_v0 }
  0x59 PF: > { %v210_v1 = vld [vmem:[%s172_s6] sm:$0x3]  ;;  %v212_v2 = vld [vmem:[%s181_s3] sm:$0x3]  ;;  %v219_v3 = vlaneseq  ;;  %p264_p9 = scmp.eq.s32.totalorder %s631_s12, 1  ;;  %v644_v12 = vmov 0.0  }
  0x5a   : > { %v211_v4 = vmul.f32 0.1, %v210_v1  ;;  %v213_v5 = vmul.f32 0.1, %v212_v2  ;;  %v259_v8 = vld [vmem:[#allocation3] sm:$0x3] }
  0x5b   : > { %v220_v6 = vshrl.u32 %v219_v3, 7  ;;  %v222_v7 = vand.u32 127, %v219_v3  ;;  %v255_v39 = vld [vmem:[#allocation2] sm:$0x3]  ;;  %vm270_vm6 = vcmask (%p264_p9), 1041408   ;;  %vm300_vm7 = vcmask (%p264_p9), 0  }
  0x5c   : > { %vm214_vm0 = vcmp.lt.f32.partialorder %v213_v5, 0.0  ;;  %vm216_vm1 = vcmp.gt.f32.partialorder %v211_v4, 0.0  ;;  %vm217_vm2 = vcmp.le.f32.partialorder %v211_v4, 10.0 }
  0x5d   : > { %v215_v9 = vsel %vm214_vm0, 0.001, %v213_v5  ;;  %vm814_vm3 = vmand %vm216_vm1, %vm217_vm2  ;;  %v226_v11 = vmul.u32 128, %v220_v6 }
  0x5e   : > { %489 = vrcp.f32 %v215_v9  ;;  %v406_v13 = vsel %vm814_vm3, 1.0, %v644_v12  ;;  %v239_v26 = vsub.f32 %v211_v4, %v215_v9 }
  0x5f   : > { %v227_v14 = vadd.s32 %v226_v11, %v222_v7  ;;  %v262_v15 = vadd.f32 %v406_v13, %v259_v8 }
  0x60   : > { %v245_v31 = vmul.f32 %v239_v26, %v239_v26 }
  0x61   : > { %v228_v16 = vcvt.s32.f32 %v227_v14  ;;  %263 = vst [vmem:[#allocation3] sm:$0x3] %v262_v15 }
  0x63   : > { %v230_v17 = vmul.f32 0.0625, %v228_v16 }
  0x65   : > { %v231_v18 = vfloor.f32 %v230_v17 }
  0x67   : > { %v232_v19 = vmul.f32 16.0, %v231_v18  ;;  %v405_v20 = vadd.f32 -8.0, %v231_v18 }
  0x68   : > { %v490_v21 = vpop.eup %489  ;;  %v281_v44 = vld [vmem:[#allocation3] sm:$0x3] (%p264_p9) }
  0x69   : > { %v233_v22 = vsub.f32 %v228_v16, %v232_v19  ;;  %v237_v23 = vmul.f32 %v490_v21, %v211_v4  ;;  %v241_v27 = vmul.f32 %v405_v20, %v405_v20  ;;  %v282_v46 = vsel (%p264_p9), %vm270_vm6, %v281_v44, 0.0 }
  0x6b   : > { %v404_v24 = vadd.f32 -8.0, %v233_v22  ;;  %v238_v25 = vsub.f32 1.0, %v237_v23 }
  0x6d   : > { %v240_v28 = vmul.f32 %v404_v24, %v404_v24  ;;  %v243_v29 = vmul.f32 %v238_v25, %v238_v25 }
  0x6f   : > { %v242_v30 = vadd.f32 %v241_v27, %v240_v28 }
  0x71   : > { %v244_v32 = vmul.f32 %v243_v29, %v242_v30 }
  0x73   : > { %v246_v33 = vadd.f32 %v245_v31, %v244_v32 }
  0x75   : > { %v247_v34 = vadd.f32 0.0001, %v246_v33 }
  0x77   : > { %491 = vrsqrt.f32 %v247_v34  ;;  %vm250_vm4 = vcmp.eq.f32.partialorder %v247_v34, inf  ;;  %v253_v36 = vand.u32 2147483648, %v247_v34  ;;  %vm252_vm5 = vcmp.eq.f32.partialorder %v247_v34, 0.0 }
  0x81   : > { %v492_v35 = vpop.eup %491 }
  0x82   : > { %v249_v37 = vmul.f32 %v492_v35, %v247_v34 }
  0x83   : > { %268 = sbr.rel (!%p264_p9) target bundleno = 422 (0x1a6), region = 44 }
  0x84   : > { %v251_v38 = vsel %vm250_vm4, %v247_v34, %v249_v37 }
  0x85   : > { %v254_v40 = vsel %vm252_vm5, %v253_v36, %v251_v38 }
  0x86   : > { %v256_v41 = vsel %vm814_vm3, %v254_v40, 0.0 }
  0x87   : > { %v257_v42 = vadd.f32 %v256_v41, %v255_v39 }
  0x89   : > { %258 = vst [vmem:[#allocation2] sm:$0x3] %v257_v42 }
  0x90   : > { %v269_v43 = vld [vmem:[#allocation2] sm:$0x3] }
  0x91   : > { %v271_v45 = vsel %vm270_vm6, %v269_v43, 0.0 }
  0x92   : > { %272 = vadd.xlane.f32.xlu0 %v271_v45 }
  0x96   : > { %283 = vadd.xlane.f32.xlu0 %v282_v46 }
 0x11f   : > { %v273_v47 = vpop.xlane.xlu0 %272 }
 0x120   : > { %v274_v48 = vrot.slane %v273_v47, 4 }
 0x122   : > { %v275_v49 = vadd.f32 %v274_v48, %v273_v47 }
 0x123   : > { %v284_v50 = vpop.xlane.xlu0 %283 }
 0x124   : > { %v276_v51 = vrot.slane %v275_v49, 2  ;;  %v285_v52 = vrot.slane %v284_v50, 4 }
 0x126   : > { %v286_v53 = vadd.f32 %v285_v52, %v284_v50  ;;  %v277_v54 = vadd.f32 %v276_v51, %v275_v49 }
 0x128   : > { %v287_v55 = vrot.slane %v286_v53, 2  ;;  %v278_v56 = vrot.slane %v277_v54, 1 }
 0x12a   : > { %v288_v57 = vadd.f32 %v287_v55, %v286_v53  ;;  %v279_v58 = vadd.f32 %v278_v56, %v277_v54 }
 0x12c   : > { %414 = vpush %v279_v58  ;;  %v289_v59 = vrot.slane %v288_v57, 1 }
 0x12e   : > { %v290_v60 = vadd.f32 %v289_v59, %v288_v57 }
 0x130   : > { %416 = vpush %v290_v60 }
 0x15d   : > { %s415_s12 = spop %414 }
 0x161   : > { %s417_s20 = spop %416 }
 0x162   : > { %v292_v61 = vstv %s417_s20 }
 0x163   : > { %493 = vrcp.f32 %v292_v61 }
 0x16d   : > { %v494_v62 = vpop.eup %493 }
 0x16e   : > { %418 = vpush %v494_v62 }
 0x19f   : > { %s419_s30 = spop %418 }
 0x1a0   : > { %s295_s26 = smul.f32 %s419_s30, %s415_s12 }
 0x1a2   : > { %s298_s5 = smul.f32 0.00390625, %s295_s26 }
 0x1a4   : > { %v299_v63 = vstv %s298_s5 }
 0x1a5   : > { %301 = vst.msk [vmem:[#allocation9] sm:$0x1] %vm300_vm7, %v299_v63 }
 0x1a6 PF: > { %p826_p6 = scmp.eq.s32.totalorder %s393_s15, 1  ;;  %s645_s27 = smov [#allocation9]  }
 0x1a7   : > { %s309_s8 = sshll.u32 %s645_s27, 4  ;;  %s310_s8 = int_to_ptr.vmem [resolvable:$true] %s309_s8 }
 0x1a8   : > { %s555_s23 = scalar_lea.vmem %s310_s8, 16  ;;  %s561_s9 = scalar_lea.vmem %s310_s8, 32 }
 0x1a9   : > { %p556_p2 = scmp.ne.s32.totalorder %s310_s8, %s555_s23  ;;  %p562_p1 = scmp.lt.s32.totalorder %s310_s8, %s310_s8 }
 0x1aa   : > { %p563_p5 = scmp.lt.s32.totalorder %s561_s9, %s555_s23 }
 0x1ab   : > { %p557_p3 = pnand %p556_p2, %p826_p6 }
 0x1ac   : > { %p564_p10 = por %p563_p5, %p562_p1 }
 0x1ad   : > { %p558_p4 = pneg %p557_p3 }
 0x1af   : > { %p565_p11 = pnand %p564_p10, %p558_p4 }
 0x1b1   : > { %568 = shalt.err (!%p565_p11)
}
 0x1b2   : > { %s569_s22 = scalar_lea.hbm %s872_s2, 16 }
 0x1b3   : > { %p570_p0 = scmp.ne.s32.totalorder %s872_s2, %s569_s22  ;;  %p575_p13 = scmp.lt.u32.totalorder %s569_s22, %s872_s2 }
 0x1b5   : > { %p571_p12 = pnand %p570_p0, %p826_p6 }
 0x1b7   : > { %p572_p8 = pneg %p571_p12 }
 0x1b9   : > { %p577_p7 = pnand %p575_p13, %p572_p8 }
 0x1bb   : > { %580 = shalt.err (!%p577_p7)
}
 0x1bc   : > { %425 = dma.vmem_to_hbm [thread:$0]  (%p826_p6), %s310_s8, 16, %s872_s2, [#allocation6]  }
 0x1bd   : > { %614 = dma.done.wait (%p826_p6), [#allocation6], 16  }
 0x1be   : > { %616 = vsyncadd (%p826_p6), [#allocation6], 4294967280 }
 0x1bf PF: > { %s19_s14 = sadd.s32 1, %s639_s14   ;;  %s885_s9 = smov %s623_s10 }
 0x1c0   : > { %p16_p9 = scmp.ge.s32.totalorder %s19_s14, 4   ;;  %s886_s10 = smov %s627_s11 }
 0x1c1   : > { %s887_s11 = smov %s712_s21  ;;  %s888_s12 = smov %s635_s13 }
 0x1c2   : > { %s889_s13 = smov %s891_s16  ;;  %18 = sbr.rel (!%p16_p9) target bundleno = 7 (0x7), region = 86 }
 0x1c9   :  { %322 = vsyncpa [#allocation5], 1 }
 0x1ca   :  { %324 = vsyncpa [#allocation5 + $0x1], 1 }
 0x1cb   :  { %325 = vsyncpa [#allocation8], 1 }
 0x1cc   :  { %327 = vsyncpa [#allocation8 + $0x1], 1 }
 0x1cd   :  { %328 = vsyncpa [#allocation6], 1 }
 0x1ce   :  { %330 = vsyncpa [#allocation6 + $0x1], 1 }

</bundles_post_ra>
